<compile_context>
chip_gen: v5e
topology: v5e:2x2
jax: 0.10.0
libtpu: 0.0.40
codegen_flags: <defaults>
</compile_context>

<pallas_src>
import jax
import jax.numpy as jnp
from jax.experimental import pallas as pl
from jax.experimental.pallas import tpu as pltpu


def _round_up(n, m):
    return ((n + m - 1) // m) * m


# --------------------------------------------------------------------------
# Kernels
# --------------------------------------------------------------------------
def _proj_kernel_single_k(x_ref, w_ref, b_ref, o_ref):
    """Whole-K GEMM tile: (tm, Ip) @ (Ip, tn) + bias, no accumulator scratch."""
    o_ref[...] = (
        jnp.dot(x_ref[...], w_ref[...], preferred_element_type=jnp.float32)
        + b_ref[...]
    ).astype(o_ref.dtype)


def _proj_kernel_multi_k(x_ref, w_ref, b_ref, o_ref):
    """K-tiled GEMM: accumulate directly into the resident f32 output block."""
    k = pl.program_id(2)

    @pl.when(k == 0)
    def _init():
        o_ref[...] = jnp.zeros_like(o_ref)

    o_ref[...] += jnp.dot(
        x_ref[...], w_ref[...], preferred_element_type=jnp.float32
    )

    @pl.when(k == pl.num_programs(2) - 1)
    def _finalize():
        o_ref[...] += b_ref[...]


# --------------------------------------------------------------------------
# Module
# --------------------------------------------------------------------------
class ProjectionVirtualNodePallas:
    """JAX/Pallas re-implementation of the PyTorch Projection_virtual_node."""

    def __init__(self, input_dim, metadata, emb_dim, key, *,
                 max_tm=512, max_tn=512, max_tk=2048):
        self.metadata = metadata
        self.emb_dim = emb_dim
        self.max_tm = max_tm

        # Per-feature input-dim bookkeeping (mirrors the torch __init__).
        self.input_dim_list = []
        self.num_features = 0
        for col_name in metadata["columns"]:
            detail = metadata["details"][col_name]
            if detail["type"] == "category":
                for cate_info in metadata["categori_embed_inform"]:
                    if cate_info["col_name"] == col_name:
                        self.input_dim_list.append(cate_info["embed_dim"])
                        break
            else:
                self.input_dim_list.append(detail["n"])
            self.num_features += 1
        self.output_dim = self.num_features * emb_dim
        assert sum(self.input_dim_list) == input_dim

        # Deterministic parameter init (mimics nn.Linear shapes).
        k_w, k_b = jax.random.split(key)
        bound = 1.0 / jnp.sqrt(input_dim)
        self.weight = jax.random.uniform(
            k_w, (self.output_dim, input_dim), jnp.float32, -bound, bound
        )
        self.bias = jax.random.uniform(
            k_b, (self.output_dim,), jnp.float32, -bound, bound
        )

        # Block-diagonal mask, built as (input_dim, output_dim) then transposed
        # to (output_dim, input_dim) like the torch module.
        mask_io = jnp.zeros((input_dim, self.output_dim), jnp.float32)
        row_idx = 0
        col_idx = 0
        for in_dim in self.input_dim_list:
            mask_io = mask_io.at[
                row_idx:row_idx + in_dim, col_idx:col_idx + emb_dim
            ].set(1.0)
            row_idx += in_dim
            col_idx += emb_dim
        self.mask = mask_io.T                      # (O, I)
        w_masked_io = (self.weight * self.mask).T  # (I, O), masked once here

        # ---- layout / padding hoisted out of the per-call path -------------
        I, O = input_dim, self.output_dim
        Ip128 = _round_up(I, 128)
        self.tk = Ip128 if Ip128 <= max_tk else max_tk
        self.Ip = _round_up(I, self.tk)

        Op128 = _round_up(O, 128)
        tn = min(max_tn, Op128)
        # Give v7x's 2 TensorCores work on the "parallel" O axis when possible.
        if Op128 >= 256 and Op128 // tn < 2:
            tn = _round_up(-(-Op128 // 2), 128)
        self.tn = tn
        self.Op = _round_up(O, self.tn)

        self.input_dim = I
        # Pre-masked, pre-padded weight in bf16 (MXU-native, half the DMA bytes).
        self.w_p = (
            jnp.pad(w_masked_io, ((0, self.Ip - I), (0, self.Op - O)))
            .astype(jnp.bfloat16)
        )
        # Bias stays f32 (added to the f32 accumulation).
        self.b_p = jnp.pad(self.bias, (0, self.Op - O)).reshape(1, self.Op)

    # ------------------------------------------------------------------
    def _projection(self, xc):
        """xc: (M, I) f32 -> (M, O) f32 via tiled Pallas GEMM on masked weight."""
        M, I = xc.shape
        assert I == self.input_dim
        O, Ip, Op, tk, tn = self.output_dim, self.Ip, self.Op, self.tk, self.tn

        # bf16 needs the second-to-last block dim to be a multiple of 16.
        tm = min(self.max_tm, _round_up(M, 16))
        Mp = _round_up(M, tm)

        xc_p = jnp.pad(xc, ((0, Mp - M), (0, Ip - I))).astype(jnp.bfloat16)

        n_k = Ip // tk
        cost = pl.CostEstimate(
            flops=2 * Mp * Ip * Op,
            transcendentals=0,
            bytes_accessed=2 * (Mp * Ip + Ip * Op) + 4 * (Mp * Op + Op),
        )

        if n_k == 1:
            grid = (Mp // tm, Op // tn)
            grid_spec = pltpu.PrefetchScalarGridSpec(
                num_scalar_prefetch=0,
                grid=grid,
                in_specs=[
                    pl.BlockSpec((tm, Ip), lambda i, j: (i, 0)),   # activations
                    pl.BlockSpec((Ip, tn), lambda i, j: (0, j)),   # masked weight
                    pl.BlockSpec((1, tn), lambda i, j: (0, j)),    # bias
                ],
                out_specs=pl.BlockSpec((tm, tn), lambda i, j: (i, j)),
            )
            kernel = _proj_kernel_single_k
            dims = ("parallel", "parallel")
        else:
            grid = (Mp // tm, Op // tn, n_k)
            grid_spec = pltpu.PrefetchScalarGridSpec(
                num_scalar_prefetch=0,
                grid=grid,
                in_specs=[
                    pl.BlockSpec((tm, tk), lambda i, j, k: (i, k)),
                    pl.BlockSpec((tk, tn), lambda i, j, k: (k, j)),
                    pl.BlockSpec((1, tn), lambda i, j, k: (0, j)),
                ],
                out_specs=pl.BlockSpec((tm, tn), lambda i, j, k: (i, j)),
            )
            kernel = _proj_kernel_multi_k
            dims = ("parallel", "parallel", "arbitrary")

        out_p = pl.pallas_call(
            kernel,
            out_shape=jax.ShapeDtypeStruct((Mp, Op), jnp.float32),
            grid_spec=grid_spec,
            compiler_params=pltpu.CompilerParams(dimension_semantics=dims),
            cost_estimate=cost,
        )(xc_p, self.w_p, self.b_p)

        return out_p[:M, :O]

    # ------------------------------------------------------------------
    def __call__(self, x, cond_vec, cond_chosen_columns):
        B = x.shape[0]
        # Fuse the two matmuls into one GEMM by stacking on the row axis.
        xc = jnp.concatenate([x, cond_vec], axis=0)     # (2B, I)
        proj = self._projection(xc)                     # (2B, O) f32
        x_proj = proj[:B]
        cond_proj = proj[B:]

        # tensor_reshape: (B, num_features*emb_dim) -> (B, num_features, emb_dim)
        cond_proj_reshape = cond_proj.reshape(B, self.num_features, self.emb_dim)
        chosen = cond_chosen_columns[:, 0]
        cond_proj_slice = jnp.take_along_axis(
            cond_proj_reshape, chosen[:, None, None], axis=1
        )[:, 0, :]
        return x_proj, cond_proj_slice


# --------------------------------------------------------------------------
if __name__ == "__main__":
    # Small synthetic metadata: 4 features (2 categorical, 2 numeric-ish).
    metadata = {
        "columns": ["c0", "c1", "c2", "c3"],
        "details": {
            "c0": {"type": "category"},
            "c1": {"type": "numeric", "n": 5},
            "c2": {"type": "category"},
            "c3": {"type": "numeric", "n": 4},
        },
        "categori_embed_inform": [
            {"col_name": "c0", "embed_dim": 3},
            {"col_name": "c2", "embed_dim": 4},
        ],
        "num_features": 4,
    }
    input_dim = 3 + 5 + 4 + 4  # 16
    emb_dim = 8
    batch = 4

    key = jax.random.PRNGKey(0)
    k_mod, k_x, k_c, k_col = jax.random.split(key, 4)

    module = ProjectionVirtualNodePallas(input_dim, metadata, emb_dim, k_mod)

    x = jax.random.normal(k_x, (batch, input_dim), jnp.float32)
    cond_vec = jax.random.normal(k_c, (batch, input_dim), jnp.float32)
    cond_chosen_columns = jax.random.randint(
        k_col, (batch, 1), 0, metadata["num_features"], dtype=jnp.int32
    )

    x_proj, cond_proj_slice = module(x, cond_vec, cond_chosen_columns)
    jax.block_until_ready((x_proj, cond_proj_slice))

    # Pure-JAX f32 reference (matches the PyTorch forward exactly).
    # Tolerance loosened because the kernel runs bf16 operands / f32 accumulate.
    w_masked = module.weight * module.mask
    x_proj_ref = x @ w_masked.T + module.bias
    cond_proj_ref = cond_vec @ w_masked.T + module.bias
    cond_slice_ref = cond_proj_ref.reshape(batch, metadata["num_features"], emb_dim)[
        jnp.arange(batch), cond_chosen_columns[:, 0]
    ]
    assert jnp.allclose(x_proj, x_proj_ref, atol=3e-2, rtol=3e-2)
    assert jnp.allclose(cond_proj_slice, cond_slice_ref, atol=3e-2, rtol=3e-2)
    assert x_proj.shape == (batch, metadata["num_features"] * emb_dim)
    assert cond_proj_slice.shape == (batch, emb_dim)

    print("KERNEL_OK")
</pallas_src>

<mosaic_0001>
module attributes {stable_mosaic.version = 11 : i64} {
  func.func @_proj_kernel_single_k(%arg0: i32, %arg1: i32, %arg2: memref<16x128xbf16, #tpu.memory_space<vmem>>, %arg3: memref<128x128xbf16, #tpu.memory_space<vmem>>, %arg4: memref<1x128xf32, #tpu.memory_space<vmem>>, %arg5: memref<16x128xf32, #tpu.memory_space<vmem>>) attributes {dimension_semantics = [#tpu.dimension_semantics<parallel>, #tpu.dimension_semantics<parallel>], iteration_bounds = array<i64: 1, 1>, scalar_prefetch = 0 : i64, scratch_operands = 0 : i64, tpu.core_type = #tpu.core_type<tc>, window_params = [{transform_indices = @transform_0, window_bounds = array<i64: 16, 128>}, {transform_indices = @transform_1, window_bounds = array<i64: 128, 128>}, {transform_indices = @transform_2, window_bounds = array<i64: 1, 128>}, {transform_indices = @transform_3, window_bounds = array<i64: 16, 128>}]} {
    %c0 = arith.constant 0 : index
    %c0_0 = arith.constant 0 : index
    %0 = vector.load %arg2[%c0, %c0_0] : memref<16x128xbf16, #tpu.memory_space<vmem>>, vector<16x128xbf16>
    %c0_1 = arith.constant 0 : index
    %c0_2 = arith.constant 0 : index
    %1 = vector.load %arg3[%c0_1, %c0_2] : memref<128x128xbf16, #tpu.memory_space<vmem>>, vector<128x128xbf16>
    %cst = arith.constant dense<0.000000e+00> : vector<16x128xf32>
    %2 = tpu.matmul %0, %1, %cst {dimension_numbers = #tpu.dot_dimension_numbers<[1], [0], [0], [1], [0, 0, 1, 1], [], []>} : vector<16x128xbf16>, vector<128x128xbf16>, vector<16x128xf32> -> vector<16x128xf32>
    %c0_3 = arith.constant 0 : index
    %c0_4 = arith.constant 0 : index
    %3 = vector.load %arg4[%c0_3, %c0_4] : memref<1x128xf32, #tpu.memory_space<vmem>>, vector<1x128xf32>
    %4 = vector.broadcast %3 : vector<1x128xf32> to vector<16x128xf32>
    %5 = arith.addf %2, %4 : vector<16x128xf32>
    %c0_5 = arith.constant 0 : index
    %c0_6 = arith.constant 0 : index
    %6 = vector.load %arg5[%c0_5, %c0_6] : memref<16x128xf32, #tpu.memory_space<vmem>>, vector<16x128xf32>
    tpu.vector_store %arg5[%c0_5, %c0_6], %5 {strides = array<i32>} : memref<16x128xf32, #tpu.memory_space<vmem>>, vector<16x128xf32>,
    return
  }
  func.func @transform_0(%arg0: i32, %arg1: i32) -> (i32, i32) {
    %c0_i32 = arith.constant 0 : i32
    %c0_i32_0 = arith.constant 0 : i32
    return %arg0, %c0_i32 : i32, i32
  }
  func.func @transform_1(%arg0: i32, %arg1: i32) -> (i32, i32) {
    %c0_i32 = arith.constant 0 : i32
    %c0_i32_0 = arith.constant 0 : i32
    return %c0_i32, %arg1 : i32, i32
  }
  func.func @transform_2(%arg0: i32, %arg1: i32) -> (i32, i32) {
    %c0_i32 = arith.constant 0 : i32
    %c0_i32_0 = arith.constant 0 : i32
    return %c0_i32, %arg1 : i32, i32
  }
  func.func @transform_3(%arg0: i32, %arg1: i32) -> (i32, i32) {
    %c0_i32 = arith.constant 0 : i32
    return %arg0, %arg1 : i32, i32
  }
}

</mosaic_0001>

<bundles_post_ra>
// kernel: tpu_custom_call.1
= control target key start
LH: loop header
LB: loop body
LE: loop exit
PB: predicated region body
PF: predicated region fallthrough
CT: control target
= control target key end

     0   :  { %8 = vsyncpa [#allocation3], 0  ;;  %s329_s0 = inlined_call_operand.hbm [shape: bf16[16,128], index: 0, kind: input, shape index: {}]   ;;  %s330_s1 = inlined_call_operand.hbm [shape: bf16[128,128], index: 1, kind: input, shape index: {}]   ;;  %s331_s2 = inlined_call_operand.vmem [shape: f32[1,128], index: 2, kind: input, shape index: {}]   ;;  %s332_s3 = inlined_call_operand.hbm [shape: f32[16,128], index: 3, kind: output, shape index: {}]  }
   0x1   :  { %9 = vsyncpa [#allocation6], 0 }
   0x2   :  { %10 = vsyncpa [#allocation4], 0  ;;  %s15_s14 = sshll.u32 %s329_s0, 4  ;;  %s290_s15 = smov [#allocation2]   ;;  %s16_s14 = int_to_ptr.hbm [resolvable:$true] %s15_s14 }
   0x3   :  { %s17_s16 = sshll.u32 %s290_s15, 4  ;;  %s28_s19 = sshll.u32 %s330_s1, 4  ;;  %s18_s16 = int_to_ptr.vmem [resolvable:$true] %s17_s16  ;;  %s29_s19 = int_to_ptr.hbm [resolvable:$true] %s28_s19 }
   0x4   :  { %s291_s20 = smov 64   ;;  %s292_s21 = smov 4  }
   0x5   :  { %23 = dma.hbm_to_vmem [thread:$0]  %s16_s14, 128, %s18_s16, [#allocation3], %s291_s20, %s291_s20, %s292_s21  }
   0x6   :  { %s293_s22 = smov [#allocation5]  }
   0x7   :  { %s30_s23 = sshll.u32 %s293_s22, 4  ;;  %s31_s23 = int_to_ptr.vmem [resolvable:$true] %s30_s23 }
   0x8   :  { %36 = dma.hbm_to_vmem [thread:$0]  %s29_s19, 1024, %s31_s23, [#allocation6], %s291_s20, %s291_s20, %s292_s21  }
   0x9   :  { %284 = dma.done.wait [#allocation3], 128  }
   0xa   :  { %285 = vsyncadd [#allocation3], 4294967168 }
   0xb   :  { %286 = dma.done.wait [#allocation6], 1024  }
   0xc   :  { %287 = vsyncadd [#allocation6], 4294966272  ;;  %v203_v0 = vld [vmem:[#allocation5 + $0x38] sm:$0xff]  ;;  %v202_v1 = vld [vmem:[#allocation5 + $0x30] sm:$0xff]  ;;  %s294_s24 = smov [#allocation7]   ;;  %s145_s28 = sshll.u32 %s332_s3, 4  ;;  %s146_s28 = int_to_ptr.hbm [resolvable:$true] %s145_s28 }
   0xd   :  { %123 = vmatpush.bf16.msra.mxu0 %v203_v0  ;;  %v201_v2 = vld [vmem:[#allocation5 + $0x28] sm:$0xff]  ;;  %v200_v3 = vld [vmem:[#allocation5 + $0x20] sm:$0xff]  ;;  %v199_v4 = vld [vmem:[#allocation5 + $0x18] sm:$0xff]  ;;  %s143_s25 = sshll.u32 %s294_s24, 4  ;;  %s295_s29 = smov 128   ;;  %s144_s25 = int_to_ptr.vmem [resolvable:$true] %s143_s25 }
   0xe   :  { %v198_v5 = vld [vmem:[#allocation5 + $0x10] sm:$0xff]  ;;  %v197_v6 = vld [vmem:[#allocation5 + $0x8] sm:$0xff]  ;;  %v196_v7 = vld [vmem:[#allocation5] sm:$0xff]  ;;  %s296_s30 = smov 8  }
   0xf   :  { %v195_v8 = vld [vmem:[#allocation2] sm:$0xff] }
  0x10   :  { %v211_v9 = vld [vmem:[%s331_s2] ss:$0 sm:$0xff] }
  0x11   :  { %124 = vmatpush.bf16.msra.mxu0 %v202_v1 }
  0x15   :  { %125 = vmatpush.bf16.msra.mxu0 %v201_v2 }
  0x19   :  { %126 = vmatpush.bf16.msra.mxu0 %v200_v3 }
  0x1d   :  { %127 = vmatpush.bf16.msra.mxu0 %v199_v4 }
  0x21   :  { %128 = vmatpush.bf16.msra.mxu0 %v198_v5 }
  0x25   :  { %129 = vmatpush.bf16.msra.mxu0 %v197_v6 }
  0x29   :  { %130 = vmatpush.bf16.msra.mxu0 %v196_v7 }
  0x2c   :  { %131 = vmatmul.bf16.vlgmr.msra.gmra.mxu0 %v195_v8 }
  0xa9   :  { %v132_v10 = vpop.f32.mrf.mxu0 }
  0xaa   :  { %v133_v11 = vadd.f32 %v211_v9, %v132_v10 }
  0xac   :  { %137 = vst [vmem:[#allocation7] sm:$0xff] %v133_v11 }
  0xb1   :  { %v134_v12 = vpop.f32.mrf.mxu0 }
  0xb2   :  { %v135_v13 = vadd.f32 %v211_v9, %v134_v12 }
  0xb4   :  { %138 = vst [vmem:[#allocation7 + $0x8] sm:$0xff] %v135_v13 }
  0xb5   :  { %151 = dma.vmem_to_hbm [thread:$0]  %s144_s25, 256, %s146_s28, [#allocation4], %s295_s29, %s295_s29, %s296_s30  }
  0xb6   :  { %288 = dma.done.wait [#allocation4], 256  }
  0xb7   :  { %289 = vsyncadd [#allocation4], 4294967040 }
  0xb8   :  { %156 = vsyncpa [#allocation3], 1 }
  0xb9   :  { %157 = vsyncpa [#allocation6], 1 }
  0xba   :  { %158 = vsyncpa [#allocation4], 1 }

</bundles_post_ra>
